<compile_context>
chip_gen: v7x
topology: tpu7x:2x2x1
jax: 0.10.0
libtpu: 0.0.40
codegen_flags: <defaults>
</compile_context>

<pallas_src>
import functools

import jax
import jax.numpy as jnp
import numpy as np
from jax import lax
from jax.experimental import pallas as pl
from jax.experimental.pallas import tpu as pltpu


def _round_up(x, m):
    return ((x + m - 1) // m) * m


def fvn_kernel(prefix_ref, x_ref, w1_ref, b1_ref, w2_ref, b2_ref, out_ref,
               *, num_seg, tile_n, tiles_per_core):
    core = pl.program_id(0)   # "parallel" axis (v7x: one per TensorCore)
    step = pl.program_id(1)   # "arbitrary" row-tile axis (carries accumulator)

    # Per-core resident segment-max accumulator lives directly in out_ref
    # (constant output block index across the inner axis). Init on step 0.
    @pl.when(step == 0)
    def _():
        out_ref[...] = jnp.full(out_ref.shape, -jnp.inf, dtype=out_ref.dtype)

    # ---- MLP hot path on the MXU: bf16 operands, f32 accumulation ----
    x = x_ref[...]
    h = jnp.dot(x, w1_ref[...], preferred_element_type=jnp.float32) + b1_ref[...]
    h = jnp.maximum(h, 0.0)                                  # f32 on the VPU
    y = jnp.dot(h.astype(w2_ref.dtype), w2_ref[...],
                preferred_element_type=jnp.float32) + b2_ref[...]

    # Global row range covered by this tile.
    tile_start = (core * tiles_per_core + step) * tile_n
    tile_end = tile_start + tile_n
    row_ids = tile_start + lax.broadcasted_iota(jnp.int32, (tile_n, 1), 0)
    neg_inf = jnp.full_like(y, -jnp.inf)                     # hoisted broadcast

    # ---- segment-max pooling: only segments intersecting this tile pay ----
    def body(i, carry):
        lo = prefix_ref[i]
        hi = prefix_ref[i + 1]

        @pl.when((lo < tile_end) & (hi > tile_start))
        def _():
            mask = (row_ids >= lo) & (row_ids < hi)
            seg_max = jnp.max(jnp.where(mask, y, neg_inf), axis=0,
                              keepdims=True)                 # (1, Dout_p)
            out_ref[pl.ds(i, 1), :] = jnp.maximum(out_ref[pl.ds(i, 1), :],
                                                  seg_max)
        return carry

    lax.fori_loop(0, num_seg, body, 0)


def feature_vector_net(x, prefix, w1, b1, w2, b2, *,
                       tile_n=256, num_cores=2, use_bf16=True):
    """x: [N, Din] f32, prefix: [S+1] int32 boundaries -> [S, Dout] f32.

    Weights are stored as [in, out] (transposed vs torch's Linear.weight).
    """
    N, Din = x.shape
    H = w1.shape[1]
    Dout = w2.shape[1]
    S = prefix.shape[0] - 1

    dt = jnp.bfloat16 if use_bf16 else jnp.float32

    # Pad lane dims of the weights / output to 128 (lane-dense MXU & stores),
    # S to a multiple of 8. x keeps its native Din (full-dim block).
    H_p = _round_up(H, 128)
    Dout_p = _round_up(Dout, 128)
    S_p = _round_up(S, 8)
    tile_n = max(8, min(tile_n, _round_up(N, 8)))
    N_p = _round_up(N, num_cores * tile_n)
    tiles_per_core = N_p // (num_cores * tile_n)

    x_p = jnp.pad(x, ((0, N_p - N), (0, 0))).astype(dt)          # rows only
    w1_p = jnp.pad(w1, ((0, 0), (0, H_p - H))).astype(dt)
    b1_p = jnp.pad(b1, (0, H_p - H)).reshape(1, H_p).astype(jnp.float32)
    w2_p = jnp.pad(w2, ((0, H_p - H), (0, Dout_p - Dout))).astype(dt)
    b2_p = jnp.pad(b2, (0, Dout_p - Dout)).reshape(1, Dout_p).astype(jnp.float32)
    prefix = prefix.astype(jnp.int32)

    grid = (num_cores, tiles_per_core)

    grid_spec = pltpu.PrefetchScalarGridSpec(
        num_scalar_prefetch=1,
        grid=grid,
        in_specs=[
            # x: tiled over rows (pipelined DMA); weights/biases resident.
            pl.BlockSpec((tile_n, Din),
                         lambda c, i, pref: (c * tiles_per_core + i, 0)),
            pl.BlockSpec((Din, H_p), lambda c, i, pref: (0, 0)),
            pl.BlockSpec((1, H_p), lambda c, i, pref: (0, 0)),
            pl.BlockSpec((H_p, Dout_p), lambda c, i, pref: (0, 0)),
            pl.BlockSpec((1, Dout_p), lambda c, i, pref: (0, 0)),
        ],
        # One partial (S_p, Dout_p) slab per core; squeezed leading dim.
        out_specs=pl.BlockSpec((None, S_p, Dout_p),
                               lambda c, i, pref: (c, 0, 0)),
    )

    kernel = functools.partial(fvn_kernel, num_seg=S, tile_n=tile_n,
                               tiles_per_core=tiles_per_core)

    out_p = pl.pallas_call(
        kernel,
        out_shape=jax.ShapeDtypeStruct((num_cores, S_p, Dout_p), jnp.float32),
        grid_spec=grid_spec,
        compiler_params=pltpu.CompilerParams(
            # Core axis is parallel (uses both v7x TCs); the row-tile axis
            # carries the resident segment-max accumulator -> "arbitrary".
            dimension_semantics=("parallel", "arbitrary"),
            # Safe on all of v5e/v6e (128 MiB phys) and v7x (64 MiB phys).
            vmem_limit_bytes=32 * 1024 * 1024,
        ),
    )(prefix, x_p, w1_p, b1_p, w2_p, b2_p)

    # Combine per-core partial maxima; slice off padding.
    return jnp.max(out_p, axis=0)[:S, :Dout]


def reference(x, prefix, w1, b1, w2, b2):
    h = jnp.maximum(x @ w1 + b1, 0.0)
    y = h @ w2 + b2
    pf = np.asarray(prefix)
    out = [jnp.max(y[pf[i]:pf[i + 1], :], axis=0, keepdims=True)
           for i in range(len(pf) - 1)]
    return jnp.concatenate(out, axis=0)


if __name__ == "__main__":
    # Small shapes consistent with the module: input_size=16, dense=1,
    # hidden_size=32, output_size=32; N=200 feature rows, 3 segments.
    N, Din, H, Dout = 200, 16, 32, 32
    key = jax.random.PRNGKey(0)
    k1, k2, k3, k4, k5 = jax.random.split(key, 5)

    x = jax.random.normal(k1, (N, Din), dtype=jnp.float32)
    w1 = jax.random.normal(k2, (Din, H), dtype=jnp.float32) * 0.1
    b1 = jax.random.normal(k3, (H,), dtype=jnp.float32) * 0.1
    w2 = jax.random.normal(k4, (H, Dout), dtype=jnp.float32) * 0.1
    b2 = jax.random.normal(k5, (Dout,), dtype=jnp.float32) * 0.1

    prefix = jnp.array([0, 50, 120, 200], dtype=jnp.int32)  # 3 segments

    out = feature_vector_net(x, prefix, w1, b1, w2, b2)
    out = jax.block_until_ready(out)

    ref = reference(x, prefix, w1, b1, w2, b2)
    # bf16 MXU operands (f32 accumulation) -> relaxed tolerance vs f32 ref.
    if not np.allclose(np.asarray(out), np.asarray(ref), rtol=2e-2, atol=2e-2):
        raise AssertionError("Pallas kernel output mismatch vs reference")

    print("KERNEL_OK")
</pallas_src>

<mosaic_0001>
module attributes {stable_mosaic.version = 11 : i64} {
  func.func @fvn_kernel(%arg0: i32, %arg1: i32, %arg2: memref<4xi32, #tpu.memory_space<smem>>, %arg3: memref<200x16xbf16, #tpu.memory_space<vmem>>, %arg4: memref<16x128xbf16, #tpu.memory_space<vmem>>, %arg5: memref<1x128xf32, #tpu.memory_space<vmem>>, %arg6: memref<128x128xbf16, #tpu.memory_space<vmem>>, %arg7: memref<1x128xf32, #tpu.memory_space<vmem>>, %arg8: memref<1x8x128xf32, #tpu.memory_space<vmem>>) attributes {dimension_semantics = [#tpu.dimension_semantics<parallel>, #tpu.dimension_semantics<arbitrary>], iteration_bounds = array<i64: 2, 1>, scalar_prefetch = 1 : i64, scratch_operands = 0 : i64, tpu.core_type = #tpu.core_type<tc>, window_params = [{transform_indices = @transform_0, window_bounds = array<i64: 200, 16>}, {pipeline_mode = #tpu.pipeline_mode<synchronous>, transform_indices = @transform_1, window_bounds = array<i64: 16, 128>}, {pipeline_mode = #tpu.pipeline_mode<synchronous>, transform_indices = @transform_2, window_bounds = array<i64: 1, 128>}, {pipeline_mode = #tpu.pipeline_mode<synchronous>, transform_indices = @transform_3, window_bounds = array<i64: 128, 128>}, {pipeline_mode = #tpu.pipeline_mode<synchronous>, transform_indices = @transform_4, window_bounds = array<i64: 1, 128>}, {transform_indices = @transform_5, window_bounds = array<i64: 1, 8, 128>}]} {
    %c0_i32 = arith.constant 0 : i32
    %0 = arith.cmpi eq, %arg1, %c0_i32 : i32
    %1 = arith.extui %0 : i1 to i32
    %c0_i32_0 = arith.constant 0 : i32
    %2 = arith.cmpi ne, %1, %c0_i32_0 : i32
    scf.if %2 {
      %cst_17 = arith.constant 0xFF800000 : f32
      %26 = vector.broadcast %cst_17 : f32 to vector<8x128xf32>
      %c0_18 = arith.constant 0 : index
      %c0_19 = arith.constant 0 : index
      %c0_20 = arith.constant 0 : index
      %27 = vector.load %arg8[%c0_18, %c0_19, %c0_20] : memref<1x8x128xf32, #tpu.memory_space<vmem>>, vector<1x8x128xf32>
      %28 = vector.shape_cast %27 : vector<1x8x128xf32> to vector<8x128xf32>
      %29 = vector.shape_cast %26 : vector<8x128xf32> to vector<1x8x128xf32>
      tpu.vector_store %arg8[%c0_18, %c0_19, %c0_20], %29 {strides = array<i32>} : memref<1x8x128xf32, #tpu.memory_space<vmem>>, vector<1x8x128xf32>,
    } else {
    }
    %c0 = arith.constant 0 : index
    %c0_1 = arith.constant 0 : index
    %3 = vector.load %arg3[%c0, %c0_1] : memref<200x16xbf16, #tpu.memory_space<vmem>>, vector<200x16xbf16>
    %c0_2 = arith.constant 0 : index
    %c0_3 = arith.constant 0 : index
    %4 = vector.load %arg4[%c0_2, %c0_3] : memref<16x128xbf16, #tpu.memory_space<vmem>>, vector<16x128xbf16>
    %cst = arith.constant dense<0.000000e+00> : vector<200x128xf32>
    %5 = tpu.matmul %3, %4, %cst {dimension_numbers = #tpu.dot_dimension_numbers<[1], [0], [0], [1], [0, 0, 1, 1], [], []>} : vector<200x16xbf16>, vector<16x128xbf16>, vector<200x128xf32> -> vector<200x128xf32>
    %c0_4 = arith.constant 0 : index
    %c0_5 = arith.constant 0 : index
    %6 = vector.load %arg5[%c0_4, %c0_5] : memref<1x128xf32, #tpu.memory_space<vmem>>, vector<1x128xf32>
    %7 = vector.broadcast %6 : vector<1x128xf32> to vector<200x128xf32>
    %8 = arith.addf %5, %7 : vector<200x128xf32>
    %cst_6 = arith.constant 0.000000e+00 : f32
    %9 = vector.broadcast %cst_6 : f32 to vector<200x128xf32>
    %10 = arith.maximumf %8, %9 : vector<200x128xf32>
    %11 = arith.truncf %10 : vector<200x128xf32> to vector<200x128xbf16>
    %c0_7 = arith.constant 0 : index
    %c0_8 = arith.constant 0 : index
    %12 = vector.load %arg6[%c0_7, %c0_8] : memref<128x128xbf16, #tpu.memory_space<vmem>>, vector<128x128xbf16>
    %cst_9 = arith.constant dense<0.000000e+00> : vector<200x128xf32>
    %13 = tpu.matmul %11, %12, %cst_9 {dimension_numbers = #tpu.dot_dimension_numbers<[1], [0], [0], [1], [0, 0, 1, 1], [], []>} : vector<200x128xbf16>, vector<128x128xbf16>, vector<200x128xf32> -> vector<200x128xf32>
    %c0_10 = arith.constant 0 : index
    %c0_11 = arith.constant 0 : index
    %14 = vector.load %arg7[%c0_10, %c0_11] : memref<1x128xf32, #tpu.memory_space<vmem>>, vector<1x128xf32>
    %15 = vector.broadcast %14 : vector<1x128xf32> to vector<200x128xf32>
    %16 = arith.addf %13, %15 : vector<200x128xf32>
    %c1_i32 = arith.constant 1 : i32
    %17 = arith.muli %arg0, %c1_i32 : i32
    %18 = arith.addi %17, %arg1 : i32
    %c200_i32 = arith.constant 200 : i32
    %19 = arith.muli %18, %c200_i32 : i32
    %c200_i32_12 = arith.constant 200 : i32
    %20 = arith.addi %19, %c200_i32_12 : i32
    %21 = tpu.iota {dimensions = array<i32: 0>} : vector<200x1xi32>
    %22 = vector.broadcast %19 : i32 to vector<200x1xi32>
    %23 = arith.addi %22, %21 : vector<200x1xi32>
    %cst_13 = arith.constant 0xFF800000 : f32
    %24 = vector.broadcast %cst_13 : f32 to vector<200x128xf32>
    %c0_i32_14 = arith.constant 0 : i32
    %c3_i32 = arith.constant 3 : i32
    %25 = arith.addi %c0_i32_14, %c3_i32 : i32
    %c1_i32_15 = arith.constant 1 : i32
    scf.for %arg9 = %c0_i32_14 to %25 step %c1_i32_15  : i32 {
      %26 = arith.index_cast %arg9 : i32 to index
      %27 = memref.load %arg2[%26] : memref<4xi32, #tpu.memory_space<smem>>
      %c1_i32_17 = arith.constant 1 : i32
      %28 = arith.addi %arg9, %c1_i32_17 : i32
      %29 = arith.index_cast %28 : i32 to index
      %30 = memref.load %arg2[%29] : memref<4xi32, #tpu.memory_space<smem>>
      %31 = arith.cmpi slt, %27, %20 : i32
      %32 = arith.cmpi sgt, %30, %19 : i32
      %33 = arith.andi %31, %32 : i1
      %34 = arith.extui %33 : i1 to i32
      %c0_i32_18 = arith.constant 0 : i32
      %35 = arith.cmpi ne, %34, %c0_i32_18 : i32
      scf.if %35 {
        %36 = vector.broadcast %27 : i32 to vector<200x1xi32>
        %37 = arith.cmpi sge, %23, %36 : vector<200x1xi32>
        %38 = vector.broadcast %30 : i32 to vector<200x1xi32>
        %39 = arith.cmpi slt, %23, %38 : vector<200x1xi32>
        %40 = arith.andi %37, %39 : vector<200x1xi1>
        %41 = vector.shape_cast %40 : vector<200x1xi1> to vector<200x1xi1>
        %42 = vector.broadcast %41 : vector<200x1xi1> to vector<200x128xi1>
        %43 = arith.select %42, %16, %24 : vector<200x128xi1>, vector<200x128xf32>
        %cst_19 = arith.constant dense<0xFF800000> : vector<128xf32>
        %44 = vector.multi_reduction <maximumf>, %43, %cst_19 [0] : vector<200x128xf32> to vector<128xf32>
        %45 = vector.shape_cast %44 : vector<128xf32> to vector<1x128xf32>
        %c0_20 = arith.constant 0 : index
        %46 = arith.index_cast %arg9 : i32 to index
        %c0_21 = arith.constant 0 : index
        %47 = vector.load %arg8[%c0_20, %46, %c0_21] : memref<1x8x128xf32, #tpu.memory_space<vmem>>, vector<1x1x128xf32>
        %48 = vector.shape_cast %47 : vector<1x1x128xf32> to vector<1x128xf32>
        %49 = arith.maximumf %48, %45 : vector<1x128xf32>
        %c0_22 = arith.constant 0 : index
        %50 = arith.index_cast %arg9 : i32 to index
        %c0_23 = arith.constant 0 : index
        %51 = vector.load %arg8[%c0_22, %50, %c0_23] : memref<1x8x128xf32, #tpu.memory_space<vmem>>, vector<1x1x128xf32>
        %52 = vector.shape_cast %51 : vector<1x1x128xf32> to vector<1x128xf32>
        %53 = vector.shape_cast %49 : vector<1x128xf32> to vector<1x1x128xf32>
        tpu.vector_store %arg8[%c0_22, %50, %c0_23], %53 {strides = array<i32>} : memref<1x8x128xf32, #tpu.memory_space<vmem>>, vector<1x1x128xf32>,
      } else {
      }
    }
    %c3_i32_16 = arith.constant 3 : i32
    return
  }
  func.func @transform_0(%arg0: i32, %arg1: i32, %arg2: memref<4xi32, #tpu.memory_space<smem>>) -> (i32, i32) {
    %c1_i32 = arith.constant 1 : i32
    %0 = arith.muli %arg0, %c1_i32 : i32
    %1 = arith.addi %0, %arg1 : i32
    %c0_i32 = arith.constant 0 : i32
    %c0_i32_0 = arith.constant 0 : i32
    return %1, %c0_i32 : i32, i32
  }
  func.func @transform_1(%arg0: i32, %arg1: i32, %arg2: memref<4xi32, #tpu.memory_space<smem>>) -> (i32, i32) {
    %c0_i32 = arith.constant 0 : i32
    %c0_i32_0 = arith.constant 0 : i32
    %c0_i32_1 = arith.constant 0 : i32
    return %c0_i32, %c0_i32_0 : i32, i32
  }
  func.func @transform_2(%arg0: i32, %arg1: i32, %arg2: memref<4xi32, #tpu.memory_space<smem>>) -> (i32, i32) {
    %c0_i32 = arith.constant 0 : i32
    %c0_i32_0 = arith.constant 0 : i32
    %c0_i32_1 = arith.constant 0 : i32
    return %c0_i32, %c0_i32_0 : i32, i32
  }
  func.func @transform_3(%arg0: i32, %arg1: i32, %arg2: memref<4xi32, #tpu.memory_space<smem>>) -> (i32, i32) {
    %c0_i32 = arith.constant 0 : i32
    %c0_i32_0 = arith.constant 0 : i32
    %c0_i32_1 = arith.constant 0 : i32
    return %c0_i32, %c0_i32_0 : i32, i32
  }
  func.func @transform_4(%arg0: i32, %arg1: i32, %arg2: memref<4xi32, #tpu.memory_space<smem>>) -> (i32, i32) {
    %c0_i32 = arith.constant 0 : i32
    %c0_i32_0 = arith.constant 0 : i32
    %c0_i32_1 = arith.constant 0 : i32
    return %c0_i32, %c0_i32_0 : i32, i32
  }
  func.func @transform_5(%arg0: i32, %arg1: i32, %arg2: memref<4xi32, #tpu.memory_space<smem>>) -> (i32, i32, i32) {
    %c0_i32 = arith.constant 0 : i32
    %c0_i32_0 = arith.constant 0 : i32
    %c0_i32_1 = arith.constant 0 : i32
    return %arg0, %c0_i32, %c0_i32_0 : i32, i32, i32
  }
}

</mosaic_0001>

<bundles_post_ra>
// kernel: tpu_custom_call.1
= control target key start
LH: loop header
LB: loop body
LE: loop exit
PB: predicated region body
PF: predicated region fallthrough
CT: control target
= control target key end

     0   :  { %s2270_s0 = inlined_call_operand.vmem [shape: s32[4], index: 0, kind: input, shape index: {}]   ;;  %s2271_s1 = inlined_call_operand.vmem [shape: bf16[400,16], index: 1, kind: input, shape index: {}]   ;;  %s2272_s2 = inlined_call_operand.vmem [shape: bf16[16,128], index: 2, kind: input, shape index: {}]   ;;  %s2273_s3 = inlined_call_operand.vmem [shape: f32[1,128], index: 3, kind: input, shape index: {}]   ;;  %s2274_s4 = inlined_call_operand.vmem [shape: bf16[128,128], index: 4, kind: input, shape index: {}]   ;;  %s2275_s5 = inlined_call_operand.vmem [shape: f32[1,128], index: 5, kind: input, shape index: {}]   ;;  %s2276_s6 = inlined_call_operand.hbm [shape: f32[2,8,128], index: 6, kind: output, shape index: {}]  }
   0x1   :  { %s11_s23 = sshll.u32 %s2270_s0, 4  ;;  %s12_s23 = int_to_ptr.vmem [resolvable:$true] %s11_s23 }
   0x2   :  { %s1434_s24 = scalar_lea.vmem %s12_s23, 16  ;;  %p1439_p1 = scmp.lt.s32.totalorder %s12_s23, %s12_s23 }
   0x3   :  { %p1435_p0 = scmp.ne.s32.totalorder %s12_s23, %s1434_s24  ;;  %p1440_p2 = scmp.lt.s32.totalorder %s1434_s24, %s1434_s24 }
   0x5   :  { %p1441_p3 = por %p1440_p2, %p1439_p1 }
   0x7   :  { %p1442_p4 = pnand %p1441_p3, %p1435_p0 }
   0x9   :  { %1445 = shalt.err (!%p1442_p4)  }
   0xa   :  { %s1536_s25 = smov [#allocation3]  }
   0xb   :  { %14 = dma.vmem_to_smem %s12_s23, 16, %s1536_s25, [#allocation2] }
   0xc   :  { %1502 = dma.done.wait [#allocation2], 16 }
   0xd   :  { %1503 = vsyncadd [#allocation2], 4294967280 }
   0xe   :  { %16 = sfence }
   0xf   :  { %17 = vsyncpa [#allocation5], 0 }
  0x10   :  { %19 = vsyncpa [#allocation5 + $0x1], 0  ;;  %s1579_s26 = smov 0   ;;  %s1581_s27 = smov 0  }
  0x11   :  { %s1583_s0 = smov 0   ;;  %s1585_s28 = smov 0  }
  0x12   :  { %s1587_s29 = smov 0   ;;  %s1589_s30 = smov 0  }
  0x13 LB: > { %s1124_s7 = sadd.s32 4294967295, %s1530_s30   ;;  %s1125_s8 = sadd.s32 4294967294, %s1530_s30   ;;  %s1530_s30 = sphi %s1589_s30, %s25_s30   ;;  %s1526_s29 = sphi %s1587_s29, %s2325_s29   ;;  %s1522_s28 = sphi %s1585_s28, %s2324_s28   ;;  %s1518_s0 = sphi %s1583_s0, %s2323_s0   ;;  %s1514_s27 = sphi %s1581_s27, %s2322_s27   ;;  %s1510_s26 = sphi %s1579_s26, %s2321_s26  }
  0x14   : > { %s37_s9 = sadd.s32 1, %s1526_s29  ;;  %s156_s10 = sadd.s32 1, %s1518_s0 }
  0x15   : > { %p39_p5 = scmp.ge.s32.totalorder %s37_s9, 2  ;;  %p166_p6 = scmp.ne.s32.totalorder %s1518_s0, %s1514_s27 }
  0x16   : > { %p167_p7 = scmp.eq.s32.totalorder %s1124_s7, 1  ;;  %p172_p8 = scmp.ne.s32.totalorder %s1514_s27, %s1510_s26 }
  0x17   : > { %s2327_s9 = smov (%p39_p5, %s37_s9), 0  ;;  %p173_p10 = scmp.eq.s32.totalorder %s1125_s8, 1 }
  0x18   : > { %p1619_p9 = por %p167_p7, %p166_p6  ;;  %s153_s12 = ssub.s32 %s1526_s29, %s2327_s9 }
  0x19   : > { %p1128_p11 = scmp.ge.s32.totalorder %s1530_s30, 1  ;;  %p154_p12 = scmp.eq.s32.totalorder %s153_s12, 0 }
  0x1a   : > { %p1626_p13 = por %p173_p10, %p172_p8  ;;  %p214_p0 = scmp.lt.s32.totalorder %s1530_s30, 3 }
  0x1b   : > { %s1632_s14 = scalar_select %p154_p12, %s1518_s0, %s156_s10  }
  0x1c   : > { %p215_p1 = pnand %p1128_p11, %p214_p0 }
  0x1e   : > { %218 = sbr.rel (%p215_p1) target bundleno = 661 (0x295), region = 40 }
  0x25   : > { %s240_s15 = sand.u32 1, %s1514_s27   ;;  %v1412_v0 = vld [vmem:[%s2272_s2] sm:$0xff]   ;;  %v1537_v1 = vmov 0.0   ;;  %s244_s19 = smul.u32 25, %s1522_s28  ;;  %vm1538_vm0 = vmmov 0   ;;  %v1539_v3 = vmov -inf  }
  0x26   : > { %s1129_s18 = sshll.u32 %s240_s15, 3  ;;  %1207 = vmatprep.subr.bf16.mxu0 %v1537_v1  ;;  %1329 = vmatprep.subr.bf16.mxu1 %v1537_v1  ;;  %v1426_v2 = vld [vmem:[%s2274_s4] sm:$0xff]   ;;  %v1427_v4 = vld [vmem:[%s2274_s4 + $0x8] sm:$0xff]   ;;  %vm360_vm1 = vcmask 130048   ;;  %v1428_v6 = vld [vmem:[%s2274_s4 + $0x10] sm:$0xff]   ;;  %s1933_s20 = smov 0  }
  0x27   : > { %1208 = vmatpush3.bf16.msra.mxu0 %v1412_v0  ;;  %1209 = vmatprep.mubr.msk.bf16.mxu0 %vm1538_vm0, %v1537_v1  ;;  %s1648_s22 = scalar_lea.vmem [#allocation4], %s1129_s18  ;;  %p245_p2 = scmp.lt.s32.totalorder %s244_s19, 49  ;;  %v1429_v7 = vld [vmem:[%s2274_s4 + $0x18] sm:$0xff]   ;;  %v1430_v9 = vld [vmem:[%s2274_s4 + $0x20] sm:$0xff]   ;;  %v1431_v11 = vld [vmem:[%s2274_s4 + $0x28] sm:$0xff]  }
  0x28   : > { %256 = vst [vmem:[%s1648_s22] sm:$0xff] %v1539_v3  ;;  %1261 = vmatprep.subr.bf16.mxu0 %v1537_v1  ;;  %1281 = vmatprep.mubr.msk.bf16.mxu1 %vm1538_vm0, %v1537_v1  ;;  %v1432_v20 = vld [vmem:[%s2274_s4 + $0x30] sm:$0xff]   ;;  %v1433_v22 = vld [vmem:[%s2274_s4 + $0x38] sm:$0xff]   ;;  %v1749_v24 = vld [vmem:[%s2273_s3] ss:$0 sm:$0xff] }
  0x29   : > { %1337 = vmatpush3.bf16.msra.mxu1 %v1426_v2  ;;  %s2329_s19 = smov (!%p245_p2, %s244_s19), 49 }
  0x2a   : > { %1330 = vmatprep.subr.bf16.mxu1 %v1537_v1  ;;  %s1130_s25 = sshll.u32 %s2329_s19, 2 }
  0x2b   : > { %s1661_s10 = scalar_lea.vmem %s2271_s1, %s1130_s25 }
  0x2c   : > { %v1413_v5 = vld [vmem:[%s1661_s10] sm:$0xff]   ;;  %v1414_v8 = vld [vmem:[%s1661_s10 + $0x8] sm:$0xff]   ;;  %v1415_v10 = vld [vmem:[%s1661_s10 + $0x10] sm:$0xff]  }
  0x2d   : > { %1338 = vmatpush3.bf16.msra.mxu1 %v1427_v4  ;;  %1210 = vmatmul.mubr.msk.bf16.vlgmr.msra.gmra.mrb[0].mxu0 %vm360_vm1, %v1413_v5  ;;  %v1416_v12 = vld [vmem:[%s1661_s10 + $0x18] sm:$0xff]   ;;  %v1417_v13 = vld [vmem:[%s1661_s10 + $0x20] sm:$0xff]   ;;  %v1418_v14 = vld [vmem:[%s1661_s10 + $0x28] sm:$0xff]  }
  0x2e   : > { %1331 = vmatprep.subr.bf16.mxu1 %v1537_v1  ;;  %1213 = vmatprep.mubr.msk.bf16.mxu0 %vm1538_vm0, %v1537_v1  ;;  %v1419_v15 = vld [vmem:[%s1661_s10 + $0x30] sm:$0xff]   ;;  %v1420_v16 = vld [vmem:[%s1661_s10 + $0x38] sm:$0xff]   ;;  %v1421_v17 = vld [vmem:[%s1661_s10 + $0x40] sm:$0xff]  }
  0x2f   : > { %1262 = vmatpush3.bf16.msra.mxu0 %v1426_v2  ;;  %v1422_v18 = vld [vmem:[%s1661_s10 + $0x48] sm:$0xff]   ;;  %v1423_v19 = vld [vmem:[%s1661_s10 + $0x50] sm:$0xff]   ;;  %v1424_v21 = vld [vmem:[%s1661_s10 + $0x58] sm:$0xff]  }
  0x30   : > { %1263 = vmatprep.subr.bf16.mxu0 %v1537_v1  ;;  %v1425_v23 = vld [vmem:[%s1661_s10 + $0x60] ss:$0 sps:$4 sm:$0xff]   ;;  %s1799_s10 = smul.u32 200, %s1522_s28 }
  0x31   : > { %1339 = vmatpush3.bf16.msra.mxu1 %v1428_v6 }
  0x32   : > { %1332 = vmatprep.subr.bf16.mxu1 %v1537_v1  ;;  %s783_s17 = sadd.s32 200, %s1799_s10 }
  0x33   : > { %1264 = vmatpush3.bf16.msra.mxu0 %v1427_v4 }
  0x34   : > { %1265 = vmatprep.subr.bf16.mxu0 %v1537_v1 }
  0x35   : > { %1340 = vmatpush3.bf16.msra.mxu1 %v1429_v7  ;;  %1214 = vmatmul.mubr.msk.bf16.gmra.mrb[4].mxu0 %vm360_vm1, %v1414_v8 }
  0x36   : > { %1333 = vmatprep.subr.bf16.mxu1 %v1537_v1  ;;  %1217 = vmatprep.mubr.msk.bf16.mxu0 %vm1538_vm0, %v1537_v1 }
  0x37   : > { %1266 = vmatpush3.bf16.msra.mxu0 %v1428_v6 }
  0x38   : > { %1267 = vmatprep.subr.bf16.mxu0 %v1537_v1 }
  0x39   : > { %1341 = vmatpush3.bf16.msra.mxu1 %v1430_v9 }
  0x3a   : > { %1334 = vmatprep.subr.bf16.mxu1 %v1537_v1 }
  0x3b   : > { %1268 = vmatpush3.bf16.msra.mxu0 %v1429_v7 }
  0x3c   : > { %1269 = vmatprep.subr.bf16.mxu0 %v1537_v1 }
  0x3d   : > { %1342 = vmatpush3.bf16.msra.mxu1 %v1431_v11  ;;  %1218 = vmatmul.mubr.msk.bf16.gmra.mrb[8].mxu0 %vm360_vm1, %v1415_v10 }
  0x3e   : > { %1335 = vmatprep.subr.bf16.mxu1 %v1537_v1  ;;  %1221 = vmatprep.mubr.msk.bf16.mxu0 %vm1538_vm0, %v1537_v1 }
  0x3f   : > { %1270 = vmatpush3.bf16.msra.mxu0 %v1430_v9 }
  0x40   : > { %1271 = vmatprep.subr.bf16.mxu0 %v1537_v1 }
  0x41   : > { %1343 = vmatpush3.bf16.msra.mxu1 %v1432_v20 }
  0x42   : > { %1336 = vmatprep.subr.bf16.mxu1 %v1537_v1 }
  0x43   : > { %1272 = vmatpush3.bf16.msra.mxu0 %v1431_v11 }
  0x44   : > { %1273 = vmatprep.subr.bf16.mxu0 %v1537_v1 }
  0x45   : > { %1222 = vmatmul.mubr.msk.bf16.gmra.mrb[12].mxu0 %vm360_vm1, %v1416_v12  ;;  %1344 = vmatpush3.bf16.msra.mxu1 %v1433_v22 }
  0x46   : > { %1225 = vmatprep.mubr.msk.bf16.mxu0 %vm1538_vm0, %v1537_v1 }
  0x47   : > { %1274 = vmatpush3.bf16.msra.mxu0 %v1432_v20 }
  0x48   : > { %1275 = vmatprep.subr.bf16.mxu0 %v1537_v1 }
  0x4b   : > { %1276 = vmatpush3.bf16.msra.mxu0 %v1433_v22 }
  0x4d   : > { %1226 = vmatmul.mubr.msk.bf16.gmra.mrb[16].mxu0 %vm360_vm1, %v1417_v13 }
  0x4e   : > { %1229 = vmatprep.mubr.msk.bf16.mxu0 %vm1538_vm0, %v1537_v1 }
  0x55   : > { %1230 = vmatmul.mubr.msk.bf16.gmra.mrb[20].mxu0 %vm360_vm1, %v1418_v14 }
  0x56   : > { %1233 = vmatprep.mubr.msk.bf16.mxu0 %vm1538_vm0, %v1537_v1 }
  0x5d   : > { %1234 = vmatmul.mubr.msk.bf16.gmra.mrb[24].mxu0 %vm360_vm1, %v1419_v15 }
  0x5e   : > { %1237 = vmatprep.mubr.msk.bf16.mxu0 %vm1538_vm0, %v1537_v1 }
  0x65   : > { %1238 = vmatmul.mubr.msk.bf16.gmra.mrb[28].mxu0 %vm360_vm1, %v1420_v16 }
  0x66   : > { %1241 = vmatprep.mubr.msk.bf16.mxu0 %vm1538_vm0, %v1537_v1 }
  0x6d   : > { %1242 = vmatmul.mubr.msk.bf16.gmra.mrb[32].mxu0 %vm360_vm1, %v1421_v17 }
  0x6e   : > { %1245 = vmatprep.mubr.msk.bf16.mxu0 %vm1538_vm0, %v1537_v1 }
  0x75   : > { %1246 = vmatmul.mubr.msk.bf16.gmra.mrb[36].mxu0 %vm360_vm1, %v1422_v18 }
  0x76   : > { %1249 = vmatprep.mubr.msk.bf16.mxu0 %vm1538_vm0, %v1537_v1 }
  0x7d   : > { %1250 = vmatmul.mubr.msk.bf16.gmra.mrb[40].mxu0 %vm360_vm1, %v1423_v19 }
  0x7e   : > { %1253 = vmatprep.mubr.msk.bf16.mxu0 %vm1538_vm0, %v1537_v1 }
  0x85   : > { %1254 = vmatmul.mubr.msk.bf16.gmra.mrb[44].mxu0 %vm360_vm1, %v1424_v21 }
  0x86   : > { %1257 = vmatprep.mubr.msk.bf16.mxu0 %vm1538_vm0, %v1537_v1 }
  0x8d   : > { %1258 = vmatmul.mubr.msk.bf16.gmra.mrb[48].mxu0 %vm360_vm1, %v1425_v23 }
  0x8e   : > { %1277 = vmatprep.mubr.msk.bf16.mxu0 %vm1538_vm0, %v1537_v1 }
 0x100   : > { %v434_v25 = vpop.f32.mrb[0].mxu0 }
 0x101   : > { %v435_v26 = vadd.f32 %v1749_v24, %v434_v25  ;;  %v1211_v27 = vpop.f32.mrb[1].mxu0 }
 0x102   : > { %v437_v28 = vpop.f32.mrb[2].mxu0 }
 0x103   : > { %v438_v29 = vadd.f32 %v1749_v24, %v437_v28  ;;  %v1212_v30 = vpop.f32.mrb[3].mxu0  ;;  %v536_v31 = vmax.f32 %v435_v26, 0.0 }
 0x105   : > { %v537_v32 = vmax.f32 %v438_v29, 0.0 }
 0x107   : > { %v561_v33 = vpack.c.bf16 %v537_v32, %v536_v31 }
 0x108   : > { %v442_v34 = vpop.f32.mrb[4].mxu0 }
 0x109   : > { %v443_v35 = vadd.f32 %v1749_v24, %v442_v34  ;;  %v1215_v36 = vpop.f32.mrb[5].mxu0  ;;  %1278 = vmatmul.mubr.bf16.vlgmr.msra.gmra.mrb[52].mxu0 %v561_v33 }
 0x10a   : > { %v445_v37 = vpop.f32.mrb[6].mxu0 }
 0x10b   : > { %v446_v38 = vadd.f32 %v1749_v24, %v445_v37  ;;  %v1216_v39 = vpop.f32.mrb[7].mxu0  ;;  %v538_v40 = vmax.f32 %v443_v35, 0.0 }
 0x10d   : > { %v539_v41 = vmax.f32 %v446_v38, 0.0 }
 0x10f   : > { %v562_v42 = vpack.c.bf16 %v539_v41, %v538_v40 }
 0x110   : > { %v450_v43 = vpop.f32.mrb[8].mxu0 }
 0x111   : > { %v451_v44 = vadd.f32 %v1749_v24, %v450_v43  ;;  %v1219_v45 = vpop.f32.mrb[9].mxu0  ;;  %1282 = vmatmul.mubr.bf16.vlgmr.msra.gmra.mrb[0].mxu1 %v562_v42 }
 0x112   : > { %v453_v46 = vpop.f32.mrb[10].mxu0  ;;  %1285 = vmatprep.mubr.msk.bf16.mxu1 %vm1538_vm0, %v1537_v1 }
 0x113   : > { %v454_v47 = vadd.f32 %v1749_v24, %v453_v46  ;;  %v1220_v48 = vpop.f32.mrb[11].mxu0  ;;  %v540_v49 = vmax.f32 %v451_v44, 0.0 }
 0x115   : > { %v541_v50 = vmax.f32 %v454_v47, 0.0 }
 0x117   : > { %v563_v51 = vpack.c.bf16 %v541_v50, %v540_v49 }
 0x118   : > { %v458_v52 = vpop.f32.mrb[12].mxu0 }
 0x119   : > { %v459_v53 = vadd.f32 %v1749_v24, %v458_v52  ;;  %v1223_v54 = vpop.f32.mrb[13].mxu0  ;;  %1286 = vmatmul.mubr.bf16.gmra.mrb[4].mxu1 %v563_v51 }
 0x11a   : > { %v461_v55 = vpop.f32.mrb[14].mxu0  ;;  %1289 = vmatprep.mubr.msk.bf16.mxu1 %vm1538_vm0, %v1537_v1 }
 0x11b   : > { %v462_v56 = vadd.f32 %v1749_v24, %v461_v55  ;;  %v1224_v57 = vpop.f32.mrb[15].mxu0  ;;  %v542_v58 = vmax.f32 %v459_v53, 0.0 }
 0x11d   : > { %v543_v59 = vmax.f32 %v462_v56, 0.0 }
 0x11f   : > { %v564_v60 = vpack.c.bf16 %v543_v59, %v542_v58 }
 0x120   : > { %v466_v61 = vpop.f32.mrb[16].mxu0 }
 0x121   : > { %v467_v62 = vadd.f32 %v1749_v24, %v466_v61  ;;  %v1227_v63 = vpop.f32.mrb[17].mxu0  ;;  %1290 = vmatmul.mubr.bf16.gmra.mrb[8].mxu1 %v564_v60 }
 0x122   : > { %v469_v0 = vpop.f32.mrb[18].mxu0  ;;  %1293 = vmatprep.mubr.msk.bf16.mxu1 %vm1538_vm0, %v1537_v1 }
 0x123   : > { %v470_v2 = vadd.f32 %v1749_v24, %v469_v0  ;;  %v1228_v3 = vpop.f32.mrb[19].mxu0  ;;  %v544_v4 = vmax.f32 %v467_v62, 0.0 }
 0x125   : > { %v545_v5 = vmax.f32 %v470_v2, 0.0 }
 0x127   : > { %v565_v6 = vpack.c.bf16 %v545_v5, %v544_v4 }
 0x128   : > { %v474_v7 = vpop.f32.mrb[20].mxu0 }
 0x129   : > { %v475_v8 = vadd.f32 %v1749_v24, %v474_v7  ;;  %v1231_v9 = vpop.f32.mrb[21].mxu0  ;;  %1294 = vmatmul.mubr.bf16.gmra.mrb[12].mxu1 %v565_v6 }
 0x12a   : > { %v477_v10 = vpop.f32.mrb[22].mxu0  ;;  %1297 = vmatprep.mubr.msk.bf16.mxu1 %vm1538_vm0, %v1537_v1 }
 0x12b   : > { %v478_v11 = vadd.f32 %v1749_v24, %v477_v10  ;;  %v1232_v12 = vpop.f32.mrb[23].mxu0  ;;  %v546_v13 = vmax.f32 %v475_v8, 0.0 }
 0x12d   : > { %v547_v14 = vmax.f32 %v478_v11, 0.0 }
 0x12f   : > { %v566_v15 = vpack.c.bf16 %v547_v14, %v546_v13 }
 0x130   : > { %v482_v16 = vpop.f32.mrb[24].mxu0 }
 0x131   : > { %v483_v17 = vadd.f32 %v1749_v24, %v482_v16  ;;  %v1235_v18 = vpop.f32.mrb[25].mxu0  ;;  %1298 = vmatmul.mubr.bf16.gmra.mrb[16].mxu1 %v566_v15  ;;  %v784_v15 = vlaneseq }
 0x132   : > { %v485_v19 = vpop.f32.mrb[26].mxu0  ;;  %1301 = vmatprep.mubr.msk.bf16.mxu1 %vm1538_vm0, %v1537_v1 }
 0x133   : > { %v486_v20 = vadd.f32 %v1749_v24, %v485_v19  ;;  %v1236_v21 = vpop.f32.mrb[27].mxu0  ;;  %v548_v22 = vmax.f32 %v483_v17, 0.0  ;;  %v785_v16 = vshrl.u32 %v784_v15, 7 }
 0x135   : > { %v549_v23 = vmax.f32 %v486_v20, 0.0  ;;  %v786_v17 = vadd.s32 8, %v785_v16  ;;  %v787_v18 = vadd.s32 16, %v785_v16  ;;  %v788_v19 = vadd.s32 24, %v785_v16 }
 0x136   : > { %v789_v20 = vadd.s32 32, %v785_v16  ;;  %v791_v21 = vadd.s32 48, %v785_v16 }
 0x137   : > { %v567_v25 = vpack.c.bf16 %v549_v23, %v548_v22  ;;  %v792_v22 = vadd.s32 56, %v785_v16  ;;  %v793_v23 = vadd.s32 64, %v785_v16 }
 0x138   : > { %v490_v26 = vpop.f32.mrb[28].mxu0 }
 0x139   : > { %v491_v27 = vadd.f32 %v1749_v24, %v490_v26  ;;  %v1239_v28 = vpop.f32.mrb[29].mxu0  ;;  %1302 = vmatmul.mubr.bf16.gmra.mrb[20].mxu1 %v567_v25  ;;  %v794_v25 = vadd.s32 72, %v785_v16  ;;  %v796_v26 = vadd.s32 88, %v785_v16 }
 0x13a   : > { %v493_v29 = vpop.f32.mrb[30].mxu0  ;;  %1305 = vmatprep.mubr.msk.bf16.mxu1 %vm1538_vm0, %v1537_v1  ;;  %v798_v28 = vadd.s32 104, %v785_v16 }
 0x13b   : > { %v494_v30 = vadd.f32 %v1749_v24, %v493_v29  ;;  %v1240_v31 = vpop.f32.mrb[31].mxu0  ;;  %v550_v32 = vmax.f32 %v491_v27, 0.0  ;;  %v797_v27 = vadd.s32 96, %v785_v16  ;;  %v799_v29 = vadd.s32 112, %v785_v16 }
 0x13c   : > { %v801_v31 = vadd.s32 128, %v785_v16 }
 0x13d   : > { %v551_v33 = vmax.f32 %v494_v30, 0.0  ;;  %v800_v30 = vadd.s32 120, %v785_v16 }
 0x13f   : > { %v568_v34 = vpack.c.bf16 %v551_v33, %v550_v32  ;;  %v802_v32 = vadd.s32 136, %v785_v16  ;;  %v803_v33 = vadd.s32 144, %v785_v16 }
 0x140   : > { %v498_v35 = vpop.f32.mrb[32].mxu0 }
 0x141   : > { %v499_v36 = vadd.f32 %v1749_v24, %v498_v35  ;;  %v1243_v37 = vpop.f32.mrb[33].mxu0  ;;  %1306 = vmatmul.mubr.bf16.gmra.mrb[24].mxu1 %v568_v34  ;;  %v804_v34 = vadd.s32 152, %v785_v16  ;;  %v805_v35 = vadd.s32 160, %v785_v16 }
 0x142   : > { %v501_v38 = vpop.f32.mrb[34].mxu0  ;;  %1309 = vmatprep.mubr.msk.bf16.mxu1 %vm1538_vm0, %v1537_v1  ;;  %v807_v37 = vadd.s32 176, %v785_v16 }
 0x143   : > { %v502_v39 = vadd.f32 %v1749_v24, %v501_v38  ;;  %v1244_v40 = vpop.f32.mrb[35].mxu0  ;;  %v552_v41 = vmax.f32 %v499_v36, 0.0  ;;  %v806_v36 = vadd.s32 168, %v785_v16  ;;  %v808_v38 = vadd.s32 184, %v785_v16 }
 0x144   : > { %v810_v40 = vstv %s1799_s10 }
 0x145   : > { %v553_v42 = vmax.f32 %v502_v39, 0.0  ;;  %v809_v39 = vadd.s32 192, %v785_v16 }
 0x147   : > { %v569_v43 = vpack.c.bf16 %v553_v42, %v552_v41  ;;  %v1803_v41 = vadd.s32 %v810_v40, %v785_v16  ;;  %v1805_v42 = vadd.s32 %v810_v40, %v786_v17 }
 0x148   : > { %v506_v44 = vpop.f32.mrb[36].mxu0 }
 0x149   : > { %v507_v45 = vadd.f32 %v1749_v24, %v506_v44  ;;  %v1247_v46 = vpop.f32.mrb[37].mxu0  ;;  %1310 = vmatmul.mubr.bf16.gmra.mrb[28].mxu1 %v569_v43  ;;  %v1807_v43 = vadd.s32 %v810_v40, %v787_v18  ;;  %v1809_v44 = vadd.s32 %v810_v40, %v788_v19 }
 0x14a   : > { %v509_v47 = vpop.f32.mrb[38].mxu0  ;;  %1313 = vmatprep.mubr.msk.bf16.mxu1 %vm1538_vm0, %v1537_v1 }
 0x14b   : > { %v510_v48 = vadd.f32 %v1749_v24, %v509_v47  ;;  %v1248_v49 = vpop.f32.mrb[39].mxu0  ;;  %v554_v50 = vmax.f32 %v507_v45, 0.0  ;;  %v1811_v45 = vadd.s32 %v810_v40, %v789_v20  ;;  %v1815_v47 = vadd.s32 %v810_v40, %v791_v21 }
 0x14c   : > { %v1819_v49 = vadd.s32 %v810_v40, %v793_v23 }
 0x14d   : > { %v555_v51 = vmax.f32 %v510_v48, 0.0  ;;  %v1817_v48 = vadd.s32 %v810_v40, %v792_v22 }
 0x14f   : > { %v570_v52 = vpack.c.bf16 %v555_v51, %v554_v50  ;;  %v1821_v50 = vadd.s32 %v810_v40, %v794_v25 }
 0x150   : > { %v514_v53 = vpop.f32.mrb[40].mxu0 }
 0x151   : > { %v515_v54 = vadd.f32 %v1749_v24, %v514_v53  ;;  %v1251_v55 = vpop.f32.mrb[41].mxu0  ;;  %1314 = vmatmul.mubr.bf16.gmra.mrb[32].mxu1 %v570_v52  ;;  %v1825_v52 = vadd.s32 %v810_v40, %v796_v26  ;;  %v1827_v53 = vadd.s32 %v810_v40, %v797_v27 }
 0x152   : > { %v517_v56 = vpop.f32.mrb[42].mxu0  ;;  %1317 = vmatprep.mubr.msk.bf16.mxu1 %vm1538_vm0, %v1537_v1  ;;  %v1831_v55 = vadd.s32 %v810_v40, %v799_v29 }
 0x153   : > { %v518_v57 = vadd.f32 %v1749_v24, %v517_v56  ;;  %v1252_v58 = vpop.f32.mrb[43].mxu0  ;;  %v556_v59 = vmax.f32 %v515_v54, 0.0  ;;  %v1829_v54 = vadd.s32 %v810_v40, %v798_v28  ;;  %v1833_v56 = vadd.s32 %v810_v40, %v800_v30 }
 0x154   : > { %v1837_v58 = vadd.s32 %v810_v40, %v802_v32 }
 0x155   : > { %v557_v60 = vmax.f32 %v518_v57, 0.0  ;;  %v1835_v57 = vadd.s32 %v810_v40, %v801_v31 }
 0x157   : > { %v571_v61 = vpack.c.bf16 %v557_v60, %v556_v59  ;;  %v1839_v59 = vadd.s32 %v810_v40, %v803_v33  ;;  %v1841_v60 = vadd.s32 %v810_v40, %v804_v34 }
 0x158   : > { %v522_v62 = vpop.f32.mrb[44].mxu0 }
 0x159   : > { %v523_v63 = vadd.f32 %v1749_v24, %v522_v62  ;;  %v1255_v0 = vpop.f32.mrb[45].mxu0  ;;  %1318 = vmatmul.mubr.bf16.gmra.mrb[36].mxu1 %v571_v61  ;;  %v1843_v61 = vadd.s32 %v810_v40, %v805_v35  ;;  %v1845_v62 = vadd.s32 %v810_v40, %v806_v36 }
 0x15a   : > { %v525_v2 = vpop.f32.mrb[46].mxu0  ;;  %1321 = vmatprep.mubr.msk.bf16.mxu1 %vm1538_vm0, %v1537_v1  ;;  %v1849_v0 = vadd.s32 %v810_v40, %v808_v38 }
 0x15b   : > { %v526_v3 = vadd.f32 %v1749_v24, %v525_v2  ;;  %v1256_v4 = vpop.f32.mrb[47].mxu0  ;;  %v558_v5 = vmax.f32 %v523_v63, 0.0  ;;  %v1847_v63 = vadd.s32 %v810_v40, %v807_v37  ;;  %v1851_v2 = vadd.s32 %v810_v40, %v809_v39 }
 0x15c   : > { %2281 = vst [vmem:[#allocation8_spill] sm:$0xff] %v1849_v0 }
 0x15d   : > { %v559_v6 = vmax.f32 %v526_v3, 0.0  ;;  %2282 = vst [vmem:[#allocation9_spill] sm:$0xff] %v1851_v2  ;;  %v1856_v3 = vld [vmem:[%s2275_s5] ss:$0 sm:$0xff] }
 0x15f   : > { %v572_v7 = vpack.c.bf16 %v559_v6, %v558_v5 }
 0x160   : > { %v530_v8 = vpop.f32.mrb[48].mxu0 }
 0x161   : > { %v531_v9 = vadd.f32 %v1749_v24, %v530_v8  ;;  %v1259_v10 = vpop.f32.mrb[49].mxu0  ;;  %1322 = vmatmul.mubr.bf16.gmra.mrb[40].mxu1 %v572_v7  ;;  %v790_v24 = vadd.s32 40, %v785_v16 }
 0x162   : > { %v533_v11 = vpop.f32.mrb[50].mxu0  ;;  %1325 = vmatprep.mubr.msk.bf16.mxu1 %vm1538_vm0, %v1537_v1  ;;  %v795_v1 = vadd.s32 80, %v785_v16 }
 0x163   : > { %v560_v12 = vmax.f32 %v531_v9, 0.0  ;;  %v1260_v13 = vpop.f32.mrb[51].mxu0  ;;  %v1813_v46 = vadd.s32 %v810_v40, %v790_v24 }
 0x164   : > { %v1823_v51 = vadd.s32 %v810_v40, %v795_v1 }
 0x165   : > { %v573_v14 = vpack.c.bf16 %v560_v12, %v560_v12 }
 0x169   : > { %1326 = vmatmul.mubr.bf16.gmra.mrb[44].mxu1 %v573_v14 }
 0x1dc   : > { %v679_v4 = vpop.f32.mrb[52].mxu0 }
 0x1dd   : > { %v1859_v5 = vadd.f32 %v1856_v3, %v679_v4  ;;  %v1279_v6 = vpop.f32.mrb[53].mxu0 }
 0x1de   : > { %v682_v7 = vpop.f32.mrb[54].mxu0 }
 0x1df   : > { %2283 = vst [vmem:[#allocation10_spill] sm:$0xff] %v1859_v5  ;;  %v1862_v8 = vadd.f32 %v1856_v3, %v682_v7  ;;  %v1280_v9 = vpop.f32.mrb[55].mxu0 }
 0x1e1   : > { %2284 = vst [vmem:[#allocation11_spill] sm:$0xff] %v1862_v8 }
 0x1e4   : > { %v687_v10 = vpop.f32.mrb[0].mxu1 }
 0x1e5   : > { %v1865_v11 = vadd.f32 %v1856_v3, %v687_v10  ;;  %v1283_v12 = vpop.f32.mrb[1].mxu1 }
 0x1e6   : > { %v690_v13 = vpop.f32.mrb[2].mxu1 }
 0x1e7   : > { %2285 = vst [vmem:[#allocation12_spill] sm:$0xff] %v1865_v11  ;;  %v1868_v14 = vadd.f32 %v1856_v3, %v690_v13  ;;  %v1284_v15 = vpop.f32.mrb[3].mxu1 }
 0x1ec   : > { %v695_v16 = vpop.f32.mrb[4].mxu1 }
 0x1ed   : > { %v1871_v17 = vadd.f32 %v1856_v3, %v695_v16  ;;  %v1287_v18 = vpop.f32.mrb[5].mxu1 }
 0x1ee   : > { %v698_v19 = vpop.f32.mrb[6].mxu1 }
 0x1ef   : > { %v1874_v20 = vadd.f32 %v1856_v3, %v698_v19  ;;  %v1288_v24 = vpop.f32.mrb[7].mxu1 }
 0x1f4   : > { %v703_v21 = vpop.f32.mrb[8].mxu1 }
 0x1f5   : > { %v1877_v22 = vadd.f32 %v1856_v3, %v703_v21  ;;  %v1291_v23 = vpop.f32.mrb[9].mxu1 }
 0x1f6   : > { %v706_v25 = vpop.f32.mrb[10].mxu1 }
 0x1f7   : > { %v1880_v1 = vadd.f32 %v1856_v3, %v706_v25  ;;  %v1292_v26 = vpop.f32.mrb[11].mxu1 }
 0x1f9   : > { %2286 = vst [vmem:[#allocation13_spill] sm:$0xff] %v1880_v1 }
 0x1fc   : > { %v711_v27 = vpop.f32.mrb[12].mxu1 }
 0x1fd   : > { %v1883_v28 = vadd.f32 %v1856_v3, %v711_v27  ;;  %v1295_v29 = vpop.f32.mrb[13].mxu1 }
 0x1fe   : > { %v714_v30 = vpop.f32.mrb[14].mxu1 }
 0x1ff   : > { %v1886_v31 = vadd.f32 %v1856_v3, %v714_v30  ;;  %v1296_v32 = vpop.f32.mrb[15].mxu1 }
 0x204   : > { %v719_v33 = vpop.f32.mrb[16].mxu1 }
 0x205   : > { %v1889_v34 = vadd.f32 %v1856_v3, %v719_v33  ;;  %v1299_v35 = vpop.f32.mrb[17].mxu1 }
 0x206   : > { %v722_v36 = vpop.f32.mrb[18].mxu1 }
 0x207   : > { %v1892_v37 = vadd.f32 %v1856_v3, %v722_v36  ;;  %v1300_v38 = vpop.f32.mrb[19].mxu1 }
 0x20c   : > { %v727_v39 = vpop.f32.mrb[20].mxu1 }
 0x20d   : > { %v1895_v40 = vadd.f32 %v1856_v3, %v727_v39  ;;  %v1303_v4 = vpop.f32.mrb[21].mxu1 }
 0x20e   : > { %v730_v6 = vpop.f32.mrb[22].mxu1 }
 0x20f   : > { %v1898_v7 = vadd.f32 %v1856_v3, %v730_v6  ;;  %v1304_v9 = vpop.f32.mrb[23].mxu1 }
 0x211   : > { %2287 = vst [vmem:[#allocation14_spill] sm:$0xff] %v1898_v7 }
 0x214   : > { %v735_v10 = vpop.f32.mrb[24].mxu1 }
 0x215   : > { %v1901_v12 = vadd.f32 %v1856_v3, %v735_v10  ;;  %v1307_v13 = vpop.f32.mrb[25].mxu1 }
 0x216   : > { %v738_v15 = vpop.f32.mrb[26].mxu1 }
 0x217   : > { %2288 = vst [vmem:[#allocation15_spill] sm:$0xff] %v1901_v12  ;;  %v1904_v16 = vadd.f32 %v1856_v3, %v738_v15  ;;  %v1308_v18 = vpop.f32.mrb[27].mxu1 }
 0x21c   : > { %v743_v19 = vpop.f32.mrb[28].mxu1 }
 0x21d   : > { %v1907_v24 = vadd.f32 %v1856_v3, %v743_v19  ;;  %v1311_v21 = vpop.f32.mrb[29].mxu1 }
 0x21e   : > { %v746_v23 = vpop.f32.mrb[30].mxu1 }
 0x21f   : > { %v1910_v25 = vadd.f32 %v1856_v3, %v746_v23  ;;  %v1312_v26 = vpop.f32.mrb[31].mxu1 }
 0x224   : > { %v751_v27 = vpop.f32.mrb[32].mxu1 }
 0x225   : > { %v1913_v29 = vadd.f32 %v1856_v3, %v751_v27  ;;  %v1315_v30 = vpop.f32.mrb[33].mxu1 }
 0x226   : > { %v754_v32 = vpop.f32.mrb[34].mxu1 }
 0x227   : > { %v1916_v33 = vadd.f32 %v1856_v3, %v754_v32  ;;  %v1316_v35 = vpop.f32.mrb[35].mxu1 }
 0x22c   : > { %v759_v36 = vpop.f32.mrb[36].mxu1 }
 0x22d   : > { %v1919_v38 = vadd.f32 %v1856_v3, %v759_v36  ;;  %v1319_v39 = vpop.f32.mrb[37].mxu1 }
 0x22e   : > { %v762_v4 = vpop.f32.mrb[38].mxu1 }
 0x22f   : > { %v1922_v6 = vadd.f32 %v1856_v3, %v762_v4  ;;  %v1320_v9 = vpop.f32.mrb[39].mxu1 }
 0x231   : > { %2289 = vst [vmem:[#allocation16_spill] sm:$0xff] %v1922_v6 }
 0x234   : > { %v767_v10 = vpop.f32.mrb[40].mxu1 }
 0x235   : > { %v1925_v13 = vadd.f32 %v1856_v3, %v767_v10  ;;  %v1323_v15 = vpop.f32.mrb[41].mxu1 }
 0x236   : > { %v770_v18 = vpop.f32.mrb[42].mxu1 }
 0x237   : > { %v1928_v19 = vadd.f32 %v1856_v3, %v770_v18  ;;  %v1324_v21 = vpop.f32.mrb[43].mxu1 }
 0x23c   : > { %v775_v23 = vpop.f32.mrb[44].mxu1 }
 0x23d   : > { %v1931_v26 = vadd.f32 %v1856_v3, %v775_v23  ;;  %v1327_v27 = vpop.f32.mrb[45].mxu1 }
 0x23e   : > { %v778_v30 = vpop.f32.mrb[46].mxu1 }
 0x23f   : > { %v1328_v32 = vpop.f32.mrb[47].mxu1 }
 0x240 LB: >> { %v2290_v0 = vld [vmem:[#allocation8_spill] sm:$0xff]  ;;  %v2291_v2 = vld [vmem:[#allocation9_spill] sm:$0xff]  ;;  %s842_s21 = sld [smem:[#allocation3 + %s1534_s20]]  ;;  %s1940_s23 = sadd.s32 1, %s1534_s20   ;;  %s1534_s20 = sphi %s1933_s20, %s2320_s20  }
 0x241   : >> { %s844_s24 = sld [smem:[#allocation3 + %s1940_s23]] }
 0x246   : >> { %p845_p3 = scmp.lt.s32.totalorder %s842_s21, %s783_s17 }
 0x247   : >> { %p846_p4 = scmp.gt.s32.totalorder %s844_s24, %s1799_s10 }
 0x249   : >> { %p847_p5 = pnand %p846_p4, %p845_p3 }
 0x24a   : >> { %v1946_v3 = vstv (!%p847_p5), %s842_s21  ;;  %v1948_v35 = vstv (!%p847_p5), %s844_s24  ;;  %v2294_v39 = vmov (!%p847_p5), 0  ;;  %v2296_v4 = vmov (!%p847_p5), 0  ;;  %v2302_v5 = vld [vmem:[#allocation10_spill] sm:$0xff] (!%p847_p5)  ;;  %v2303_v8 = vld [vmem:[#allocation11_spill] sm:$0xff] (!%p847_p5)  ;;  %v2305_v11 = vld [vmem:[#allocation12_spill] sm:$0xff] (!%p847_p5)  ;;  %s1033_s25 = scalar_lea.vmem (!%p847_p5), %s1648_s22, %s1534_s20 [#allocation4] }
 0x24b   : >> { %850 = sbr.rel (%p847_p5) target bundleno = 635 (0x27b), region = 55  ;;  %vm852_vm2 = vcmp.ge.s32.totalorder (!%p847_p5), %v1803_v41, %v1946_v3  ;;  %vm853_vm3 = vcmp.ge.s32.totalorder (!%p847_p5), %v1805_v42, %v1946_v3  ;;  %vm854_vm4 = vcmp.ge.s32.totalorder (!%p847_p5), %v1807_v43, %v1946_v3  ;;  %vm878_vm5 = vcmp.lt.s32.totalorder (!%p847_p5), %v1803_v41, %v1948_v35  ;;  %v2308_v1 = vld [vmem:[#allocation13_spill] sm:$0xff] (!%p847_p5)  ;;  %v2315_v7 = vld [vmem:[#allocation14_spill] sm:$0xff] (!%p847_p5)  ;;  %v2316_v12 = vld [vmem:[#allocation15_spill] sm:$0xff] (!%p847_p5) }
 0x24c   : >> { %vm879_vm6 = vcmp.lt.s32.totalorder (!%p847_p5), %v1805_v42, %v1948_v35  ;;  %vm880_vm7 = vcmp.lt.s32.totalorder (!%p847_p5), %v1807_v43, %v1948_v35  ;;  %vm855_vm8 = vcmp.ge.s32.totalorder (!%p847_p5), %v1809_v44, %v1946_v3  ;;  %vm881_vm9 = vcmp.lt.s32.totalorder (!%p847_p5), %v1809_v44, %v1948_v35  ;;  %vm1966_vm10 = vmand (!%p847_p5), %vm852_vm2, %vm878_vm5  ;;  %v2319_v6 = vld [vmem:[#allocation16_spill] sm:$0xff] (!%p847_p5) }
 0x24d   : >> { %vm856_vm11 = vcmp.ge.s32.totalorder (!%p847_p5), %v1811_v45, %v1946_v3  ;;  %vm882_vm12 = vcmp.lt.s32.totalorder (!%p847_p5), %v1811_v45, %v1948_v35  ;;  %vm1974_vm13 = vmand (!%p847_p5), %vm853_vm3, %vm879_vm6  ;;  %vm857_vm14 = vcmp.ge.s32.totalorder (!%p847_p5), %v1813_v46, %v1946_v3  ;;  %vm883_vm15 = vcmp.lt.s32.totalorder (!%p847_p5), %v1813_v46, %v1948_v35 }
 0x24e   : >> { %v2295_v39 = vsel (!%p847_p5), %vm1974_vm13, 4294967295, %v2294_v39  ;;  %vm1982_vm0 = vmand (!%p847_p5), %vm854_vm4, %vm880_vm7  ;;  %vm858_vm1 = vcmp.ge.s32.totalorder (!%p847_p5), %v1815_v47, %v1946_v3  ;;  %vm884_vm3 = vcmp.lt.s32.totalorder (!%p847_p5), %v1815_v47, %v1948_v35  ;;  %vm860_vm6 = vcmp.ge.s32.totalorder (!%p847_p5), %v1819_v49, %v1946_v3 }
 0x24f   : >> { %v2297_v4 = vsel (!%p847_p5), %vm1982_vm0, 4294967295, %v2296_v4  ;;  %vm1992_vm5 = vmand (!%p847_p5), %vm855_vm8, %vm881_vm9  ;;  %vm885_vm0 = vcmp.lt.s32.totalorder (!%p847_p5), %v1817_v48, %v1948_v35  ;;  %vm886_vm13 = vcmp.lt.s32.totalorder (!%p847_p5), %v1819_v49, %v1948_v35  ;;  %vm887_vm8 = vcmp.lt.s32.totalorder (!%p847_p5), %v1821_v50, %v1948_v35 }
 0x250   : >> { %vm907_vm2 = vmand (!%p847_p5), %vm856_vm11, %vm882_vm12  ;;  %v978_v15 = vsel (!%p847_p5), %vm1966_vm10, %v2302_v5, -inf  ;;  %vm2304_vm7 = vnez (!%p847_p5), %v2295_v39  ;;  %vm2306_vm11 = vnez (!%p847_p5), %v2297_v4  ;;  %v981_v23 = vsel (!%p847_p5), %vm1992_vm5, %v1868_v14, -inf }
 0x251   : >> { %vm2008_vm9 = vmand (!%p847_p5), %vm857_vm14, %vm883_vm15  ;;  %v979_v18 = vsel (!%p847_p5), %vm2304_vm7, %v2303_v8, -inf  ;;  %v980_v21 = vsel (!%p847_p5), %vm2306_vm11, %v2305_v11, -inf  ;;  %v982_v27 = vsel (!%p847_p5), %vm907_vm2, %v1871_v17, -inf  ;;  %vm863_vm10 = vcmp.ge.s32.totalorder (!%p847_p5), %v1825_v52, %v1946_v3  ;;  %v1034_v8 = vld [vmem:[%s1033_s25] sm:$0x1] (!%p847_p5) }
 0x252   : >> { %vm909_vm4 = vmand %vm858_vm1, %vm884_vm3  ;;  %v983_v30 = vsel %vm2008_vm9, %v1874_v20, -inf  ;;  %vm888_vm12 = vcmp.lt.s32.totalorder %v1823_v51, %v1948_v35  ;;  %vm2307_vm14 = vcmp.ge.s32.totalorder %v1817_v48, %v1946_v3  ;;  %v1003_v36 = vmax.f32 %v978_v15, %v982_v27 }
 0x253   : >> { %vm910_vm15 = vmand %vm2307_vm14, %vm885_vm0  ;;  %v984_v32 = vsel %vm909_vm4, %v1877_v22, -inf  ;;  %vm889_vm1 = vcmp.lt.s32.totalorder %v1825_v52, %v1948_v35  ;;  %v1004_v4 = vmax.f32 %v979_v18, %v983_v30  ;;  %vm864_vm0 = vcmp.ge.s32.totalorder %v1827_v53, %v1946_v3 }
 0x254   : >> { %vm911_vm2 = vmand %vm860_vm6, %vm886_vm13  ;;  %v985_v39 = vsel %vm910_vm15, %v2308_v1, -inf  ;;  %v1005_v9 = vmax.f32 %v980_v21, %v984_v32  ;;  %vm890_vm3 = vcmp.lt.s32.totalorder %v1827_v53, %v1948_v35  ;;  %vm2309_vm5 = vcmp.ge.s32.totalorder %v1821_v50, %v1946_v3 }
 0x255   : >> { %vm2055_vm4 = vmand %vm2309_vm5, %vm887_vm8  ;;  %v986_v15 = vsel %vm911_vm2, %v1883_v28, -inf  ;;  %v1006_v18 = vmax.f32 %v981_v23, %v985_v39  ;;  %vm865_vm13 = vcmp.ge.s32.totalorder %v1829_v54, %v1946_v3  ;;  %vm891_vm6 = vcmp.lt.s32.totalorder %v1829_v54, %v1948_v35 }
 0x256   : >> { %vm2312_vm7 = vcmp.ge.s32.totalorder %v1823_v51, %v1946_v3  ;;  %v987_v21 = vsel %vm2055_vm4, %v1886_v31, -inf  ;;  %v1007_v27 = vmax.f32 %v1003_v36, %v986_v15  ;;  %vm866_vm8 = vcmp.ge.s32.totalorder %v1831_v55, %v1946_v3  ;;  %vm915_vm2 = vmand %vm864_vm0, %vm890_vm3 }
 0x257   : >> { %vm913_vm9 = vmand %vm2312_vm7, %vm888_vm12  ;;  %vm867_vm11 = vcmp.ge.s32.totalorder %v1833_v56, %v1946_v3  ;;  %vm892_vm14 = vcmp.lt.s32.totalorder %v1831_v55, %v1948_v35  ;;  %vm893_vm15 = vcmp.lt.s32.totalorder %v1833_v56, %v1948_v35  ;;  %v1008_v32 = vmax.f32 %v1004_v4, %v987_v21 }
 0x258   : >> { %vm914_vm12 = vmand %vm863_vm10, %vm889_vm1  ;;  %v988_v23 = vsel %vm913_vm9, %v1889_v34, -inf  ;;  %vm868_vm5 = vcmp.ge.s32.totalorder %v1835_v57, %v1946_v3  ;;  %vm894_vm10 = vcmp.lt.s32.totalorder %v1835_v57, %v1948_v35  ;;  %v990_v10 = vsel %vm915_vm2, %v1895_v40, -inf }
 0x259   : >> { %v989_v30 = vsel %vm914_vm12, %v1892_v37, -inf  ;;  %v1009_v36 = vmax.f32 %v1005_v9, %v988_v23  ;;  %vm2105_vm1 = vmand %vm865_vm13, %vm891_vm6  ;;  %vm869_vm0 = vcmp.ge.s32.totalorder %v1837_v58, %v1946_v3  ;;  %vm895_vm3 = vcmp.lt.s32.totalorder %v1837_v58, %v1948_v35 }
 0x25a   : >> { %v1010_v4 = vmax.f32 %v1006_v18, %v989_v30  ;;  %vm917_vm4 = vmand %vm866_vm8, %vm892_vm14  ;;  %v991_v9 = vsel %vm2105_vm1, %v2315_v7, -inf  ;;  %v1011_v15 = vmax.f32 %v1007_v27, %v990_v10  ;;  %vm870_vm13 = vcmp.ge.s32.totalorder %v1839_v59, %v1946_v3 }
 0x25b   : >> { %vm871_vm6 = vcmp.ge.s32.totalorder %v1841_v60, %v1946_v3  ;;  %vm896_vm7 = vcmp.lt.s32.totalorder %v1839_v59, %v1948_v35  ;;  %vm918_vm9 = vmand %vm867_vm11, %vm893_vm15  ;;  %v992_v18 = vsel %vm917_vm4, %v2316_v12, -inf  ;;  %vm897_vm8 = vcmp.lt.s32.totalorder %v1841_v60, %v1948_v35 }
 0x25c   : >> { %vm919_vm14 = vmand %vm868_vm5, %vm894_vm10  ;;  %v993_v21 = vsel %vm918_vm9, %v1904_v16, -inf  ;;  %v1012_v27 = vmax.f32 %v1008_v32, %v991_v9  ;;  %v1013_v23 = vmax.f32 %v1009_v36, %v992_v18  ;;  %vm872_vm12 = vcmp.ge.s32.totalorder %v1843_v61, %v1946_v3 }
 0x25d   : >> { %vm898_vm11 = vcmp.lt.s32.totalorder %v1843_v61, %v1948_v35  ;;  %vm2155_vm15 = vmand %vm869_vm0, %vm895_vm3  ;;  %v994_v39 = vsel %vm919_vm14, %v1907_v24, -inf  ;;  %v1014_v32 = vmax.f32 %v1010_v4, %v993_v21  ;;  %vm873_vm2 = vcmp.ge.s32.totalorder %v1845_v62, %v1946_v3 }
 0x25e   : >> { %vm899_vm5 = vcmp.lt.s32.totalorder %v1845_v62, %v1948_v35  ;;  %vm921_vm10 = vmand %vm870_vm13, %vm896_vm7  ;;  %v995_v36 = vsel %vm2155_vm15, %v1910_v25, -inf  ;;  %v1015_v10 = vmax.f32 %v1011_v15, %v994_v39  ;;  %vm874_vm1 = vcmp.ge.s32.totalorder %v1847_v63, %v1946_v3 }
 0x25f   : >> { %vm875_vm0 = vcmp.ge.s32.totalorder %v2290_v0, %v1946_v3  ;;  %vm900_vm3 = vcmp.lt.s32.totalorder %v1847_v63, %v1948_v35  ;;  %vm922_vm4 = vmand %vm871_vm6, %vm897_vm8  ;;  %v996_v4 = vsel %vm921_vm10, %v1913_v29, -inf  ;;  %vm901_vm13 = vcmp.lt.s32.totalorder %v2290_v0, %v1948_v35 }
 0x260   : >> { %vm923_vm7 = vmand %vm872_vm12, %vm898_vm11  ;;  %v997_v9 = vsel %vm922_vm4, %v1916_v33, -inf  ;;  %v1016_v15 = vmax.f32 %v1012_v27, %v995_v36  ;;  %v1017_v18 = vmax.f32 %v1013_v23, %v996_v4  ;;  %vm876_vm9 = vcmp.ge.s32.totalorder %v2291_v2, %v1946_v3 }
 0x261   : >> { %vm902_vm6 = vcmp.lt.s32.totalorder %v2291_v2, %v1948_v35  ;;  %vm924_vm8 = vmand %vm873_vm2, %vm899_vm5  ;;  %v998_v21 = vsel %vm923_vm7, %v1919_v38, -inf  ;;  %v1018_v30 = vmax.f32 %v1014_v32, %v997_v9 }
 0x262   : >> { %vm925_vm14 = vmand %vm874_vm1, %vm900_vm3  ;;  %v999_v27 = vsel %vm924_vm8, %v2319_v6, -inf  ;;  %v1019_v23 = vmax.f32 %v1015_v10, %v998_v21 }
 0x263   : >> { %vm926_vm12 = vmand %vm875_vm0, %vm901_vm13  ;;  %v1000_v35 = vsel %vm925_vm14, %v1925_v13, -inf  ;;  %v1020_v36 = vmax.f32 %v1016_v15, %v999_v27 }
 0x264   : >> { %vm927_vm11 = vmand %vm876_vm9, %vm902_vm6  ;;  %v1001_v39 = vsel %vm926_vm12, %v1928_v19, -inf  ;;  %v1021_v32 = vmax.f32 %v1017_v18, %v1000_v35 }
 0x265   : >> { %v1002_v4 = vsel %vm927_vm11, %v1931_v26, -inf  ;;  %v1022_v9 = vmax.f32 %v1018_v30, %v1001_v39 }
 0x266   : >> { %v1023_v1 = vmax.f32 %v1019_v23, %v1002_v4 }
 0x267   : >> { %v1025_v2 = vmax.f32 %v1021_v32, %v1022_v9 }
 0x268   : >> { %v1024_v5 = vmax.f32 %v1023_v1, %v1020_v36 }
 0x26a   : >> { %v1026_v10 = vmax.f32 %v1024_v5, %v1025_v2 }
 0x26c   : >> { %v1027_v21 = vrot.slane %v1026_v10, 4 }
 0x26e   : >> { %v1028_v6 = vmax.f32 %v1026_v10, %v1027_v21 }
 0x270   : >> { %v1029_v3 = vrot.slane %v1028_v6, 2 }
 0x272   : >> { %v1030_v0 = vmax.f32 %v1028_v6, %v1029_v3 }
 0x274   : >> { %v1031_v7 = vrot.slane %v1030_v0, 1 }
 0x276   : >> { %v1032_v11 = vmax.f32 %v1030_v0, %v1031_v7 }
 0x278   : >> { %v1035_v12 = vmax.f32 %v1034_v8, %v1032_v11 }
 0x27a   : >> { %1036 = vst [vmem:[%s1033_s25] sm:$0x1] %v1035_v12 }
 0x27b PF: >> { %p838_p6 = scmp.ge.s32.totalorder %s1940_s23, 3   ;;  %s2320_s20 = smov %s1940_s23 }
 0x27c   : > { %s1169_s7 = sshll.u32 (%p838_p6), %s1522_s28, 7  ;;  %s1051_s18 = sshll.u32 (%p838_p6), %s1648_s22, 4  ;;  %s1052_s18 = int_to_ptr.vmem [resolvable:$true] %s1051_s18 }
 0x27d   : > { %840 = sbr.rel (!%p838_p6) target bundleno = 576 (0x240), region = 91  ;;  %s2226_s16 = scalar_lea.hbm (%p838_p6), %s2276_s6, %s1169_s7 }
 0x27e   : > { %s1038_s19 = scalar_lea.sflag (%p838_p6), [#allocation5], %s240_s15  ;;  %s1446_s20 = scalar_lea.vmem (%p838_p6), %s1052_s18, 128 }
 0x27f   : > { %p1447_p7 = scmp.ne.s32.totalorder (%p838_p6), %s1052_s18, %s1446_s20  ;;  %s1540_s21 = smov (%p838_p6), [#allocation4]  }
 0x280   : > { %s1450_s10 = sshll.u32 (%p838_p6), %s1540_s21, 4  ;;  %s1451_s10 = int_to_ptr.vmem [resolvable:$false] %s1450_s10 }
 0x281   : > { %p1448_p8 = pnand (%p838_p6), %p1447_p7, %p1619_p9  ;;  %s1452_s17 = scalar_lea.vmem (%p838_p6), %s1451_s10, 256 }
 0x282   : > { %p1453_p11 = scmp.lt.s32.totalorder (%p838_p6), %s1052_s18, %s1451_s10  ;;  %p1454_p12 = scmp.lt.s32.totalorder (%p838_p6), %s1452_s17, %s1446_s20 }
 0x283   : > { %p1449_p10 = pneg (%p838_p6), %p1448_p8 }
 0x284   : > { %p1455_p0 = por %p1454_p12, %p1453_p11 }
 0x286   : > { %p1456_p1 = pnand %p1455_p0, %p1449_p10 }
 0x288   : > { %1459 = shalt.err (!%p1456_p1)
}
 0x289   : > { %s1460_s28 = scalar_lea.hbm %s2226_s16, 128  ;;  %s1464_s23 = scalar_lea.hbm %s2276_s6, 256 }
 0x28a   : > { %p1461_p2 = scmp.ne.s32.totalorder %s2226_s16, %s1460_s28  ;;  %p1465_p5 = scmp.lt.u32.totalorder %s2226_s16, %s2276_s6 }
 0x28b   : > { %p1466_p6 = scmp.lt.u32.totalorder %s1464_s23, %s1460_s28  ;;  %p1468_p8 = scmp.lt.u32.totalorder %s1460_s28, %s2226_s16 }
 0x28c   : > { %p1462_p3 = pnand %p1461_p2, %p1619_p9 }
 0x28d   : > { %p1467_p7 = por %p1466_p6, %p1465_p5 }
 0x28e   : > { %p1463_p4 = pneg %p1462_p3 }
 0x28f   : > { %p1469_p10 = por %p1468_p8, %p1467_p7 }
 0x291   : > { %p1470_p11 = pnand %p1469_p10, %p1463_p4 }
 0x293   : > { %1473 = shalt.err (!%p1470_p11)
}
 0x294   : > { %1345 = dma.vmem_to_hbm [thread:$0]  (%p1619_p9), %s1052_s18, 128, %s2226_s16, %s1038_s19  }
 0x295 PF: > { %p1351_p12 = scmp.ge.s32.totalorder %s1530_s30, 2  ;;  %s1063_s7 = sand.u32 1, %s1510_s26  }
 0x296   : > { %s1064_s8 = scalar_lea.sflag [#allocation5], %s1063_s7 }
 0x297   : > { %p1348_p0 = pnand %p1351_p12, %p1626_p13 }
 0x299   : > { %1505 = dma.done.wait (!%p1348_p0), %s1064_s8, 128  }
 0x29a   : > { %1507 = vsyncadd (!%p1348_p0), %s1064_s8, 4294967168  ;;  %s25_s30 = sadd.s32 1, %s1530_s30   ;;  %s2321_s26 = smov %s1514_s27 }
 0x29b   : > { %p22_p1 = scmp.ge.s32.totalorder %s25_s30, 4   ;;  %s2322_s27 = smov %s1518_s0 }
 0x29c   : > { %s2323_s0 = smov %s1632_s14  ;;  %s2324_s28 = smov %s1526_s29 }
 0x29d   : > { %s2325_s29 = smov %s2327_s9  ;;  %24 = sbr.rel (!%p22_p1) target bundleno = 19 (0x13), region = 102 }
 0x2a4   :  { %1069 = vsyncpa [#allocation5], 1 }
 0x2a5   :  { %1071 = vsyncpa [#allocation5 + $0x1], 1 }

</bundles_post_ra>
